<compile_context>
chip_gen: v6e
topology: v6e:2x2x1
jax: 0.10.0
libtpu: 0.0.40
codegen_flags: <defaults>
</compile_context>

<pallas_src>
import functools

import jax
import jax.numpy as jnp
from jax.experimental import pallas as pl
from jax.experimental.pallas import tpu as pltpu


def _mha_kernel(q_ref, k_ref, v_ref, bias_ref,
                wq_ref, bq_ref, wk_ref, bk_ref, wv_ref, bv_ref,
                wo_ref, bo_ref, o_ref, kh_ref, vh_ref,
                *, num_heads, att_size, scale, compute_dtype):
    # Blocks: q (1, tq, H); k/v (1, S, H); bias (1, nh, tq, S); out (1, tq, H).
    tq = q_ref.shape[1]
    S = k_ref.shape[1]
    H = num_heads * att_size
    cdt = compute_dtype

    # K/V projections + head relayout once per batch element; cached in
    # persistent VMEM scratch and reused by every query tile of this batch.
    @pl.when(pl.program_id(1) == 0)
    def _():
        kp = jnp.dot(k_ref[0], wk_ref[...],
                     preferred_element_type=jnp.float32) + bk_ref[0]
        vp = jnp.dot(v_ref[0], wv_ref[...],
                     preferred_element_type=jnp.float32) + bv_ref[0]
        kh_ref[...] = kp.reshape(S, num_heads, att_size).transpose(1, 0, 2).astype(cdt)
        vh_ref[...] = vp.reshape(S, num_heads, att_size).transpose(1, 0, 2).astype(cdt)

    # Q projection for this query tile; the 1/sqrt(dk) scale is a VPU multiply
    # on the small (tq, H) tensor (hides under MXU slack).
    # TODO(synk): a fused (H, 3H) QKV matmul would need q is k is v; the module
    # signature keeps them as distinct inputs, so projections stay separate.
    qp = jnp.dot(q_ref[0], wq_ref[...],
                 preferred_element_type=jnp.float32) + bq_ref[0]
    qp = qp * scale
    qh = qp.reshape(tq, num_heads, att_size).transpose(1, 0, 2).astype(cdt)

    # Batched QK^T over all heads; contracting dk directly (no K transpose).
    s = jnp.einsum('hqd,hkd->hqk', qh, kh_ref[...],
                   preferred_element_type=jnp.float32)            # (nh, tq, S)
    s = s + bias_ref[0].astype(jnp.float32)                       # bias add in f32

    # Numerically-stable softmax along the key axis; normalization deferred
    # until after the PV matmul (rescale (nh, tq, dk), not (nh, tq, S)).
    m = jnp.max(s, axis=-1, keepdims=True)
    e = jnp.exp(s - m)
    l = jnp.sum(e, axis=-1, keepdims=True)                        # (nh, tq, 1)

    # TODO(synk): attention dropout treated as identity (inference mode).
    ctx = jnp.einsum('hqk,hkd->hqd', e.astype(cdt), vh_ref[...],
                     preferred_element_type=jnp.float32)          # (nh, tq, dk)
    ctx = ctx * pl.reciprocal(l, approx=True)

    # (nh, tq, dk) -> (tq, H) and output projection.
    ctx = ctx.transpose(1, 0, 2).reshape(tq, H)
    out = jnp.dot(ctx.astype(cdt), wo_ref[...],
                  preferred_element_type=jnp.float32) + bo_ref[0]
    o_ref[0] = out.astype(o_ref.dtype)


def _chip_vmem_bytes():
    """Physical per-core VMEM (falls back to the v7x value, 64 MiB)."""
    try:
        info = pltpu.get_tpu_info()
        cap = getattr(info, "vmem_capacity_bytes", None)
        if cap:
            return int(cap)
    except Exception:
        pass
    return 64 * 2**20


def _pick_query_tile(S, target):
    """Largest multiple of 8 that divides S and is <= target; else full S."""
    if S <= target or S % 8 != 0:
        return S
    start = (min(target, S) // 8) * 8
    for cand in range(start, 7, -8):
        if S % cand == 0:
            return cand
    return S


def multi_head_attention(q, k, v, attn_bias, params, *, num_heads,
                         use_bf16=False, q_tile=256):
    B, S, H = q.shape
    att_size = H // num_heads
    scale = float(att_size) ** -0.5
    out_dtype = q.dtype
    nh = num_heads

    wq, bq, wk, bk, wv, bv, wo, bo = params

    compute_dtype = jnp.bfloat16 if use_bf16 else jnp.float32
    if use_bf16:
        # Halves HBM/VMEM traffic for activations, weights and the bias stream
        # (largest DMA).  MXU accumulates in f32; softmax math stays f32.
        q, k, v = (x.astype(jnp.bfloat16) for x in (q, k, v))
        wq, bq, wk, bk, wv, bv, wo, bo = (
            w.astype(jnp.bfloat16) for w in (wq, bq, wk, bk, wv, bv, wo, bo))
        attn_bias = attn_bias.astype(jnp.bfloat16)

    tq = _pick_query_tile(S, q_tile)
    n_tq = S // tq

    kernel = functools.partial(_mha_kernel, num_heads=nh, att_size=att_size,
                               scale=scale, compute_dtype=compute_dtype)

    q_spec = pl.BlockSpec((1, tq, H), lambda b, t: (b, t, 0))
    kv_spec = pl.BlockSpec((1, S, H), lambda b, t: (b, 0, 0))
    bias_spec = pl.BlockSpec((1, nh, tq, S), lambda b, t: (b, 0, t, 0))
    out_spec = pl.BlockSpec((1, tq, H), lambda b, t: (b, t, 0))
    # Constant index maps across the whole grid -> single-buffer the weights.
    w_spec = pl.BlockSpec((H, H), lambda b, t: (0, 0),
                          pipeline_mode=pl.Buffered(1))
    b_spec = pl.BlockSpec((1, H), lambda b, t: (0, 0),
                          pipeline_mode=pl.Buffered(1))

    # Scoped-VMEM budget from the actual per-step blocks, clamped to physical
    # VMEM (v7x: 64 MiB) minus headroom.
    act = jnp.dtype(compute_dtype).itemsize
    bias_isz = jnp.dtype(attn_bias.dtype).itemsize
    out_isz = jnp.dtype(out_dtype).itemsize
    dk_pad = max(att_size, 128)            # lane padding of head-major scratch
    need = (
        2 * (tq * H + 2 * S * H) * act         # q/k/v blocks, double-buffered
        + 2 * nh * tq * S * bias_isz           # bias block, double-buffered
        + 2 * tq * H * out_isz                 # output block, double-buffered
        + (4 * H * H + 4 * H) * act            # single-buffered weights/biases
        + 2 * nh * S * dk_pad * act            # persistent K/V head scratch
        + 4 * (2 * S * H + tq * H)             # f32 projection temporaries
        + 4 * 3 * nh * tq * S                  # scores + exp (+ relayout)
        + 4 * 2 * nh * tq * dk_pad             # context (+ relayout copy)
    )
    cap = _chip_vmem_bytes() - 8 * 2**20
    vmem_limit = int(max(min(need + (4 << 20), cap), min(32 * 2**20, cap)))

    return pl.pallas_call(
        kernel,
        out_shape=jax.ShapeDtypeStruct((B, S, H), out_dtype),
        grid_spec=pltpu.PrefetchScalarGridSpec(
            num_scalar_prefetch=0,
            grid=(B, n_tq),
            in_specs=[q_spec, kv_spec, kv_spec, bias_spec,
                      w_spec, b_spec, w_spec, b_spec, w_spec, b_spec,
                      w_spec, b_spec],
            out_specs=out_spec,
            scratch_shapes=[
                pltpu.VMEM((nh, S, att_size), compute_dtype),   # K heads
                pltpu.VMEM((nh, S, att_size), compute_dtype),   # V heads
            ],
        ),
        compiler_params=pltpu.CompilerParams(
            # Batch axis feeds both TensorCores on v7x; query-tile axis must
            # stay "arbitrary" because it carries the per-batch K/V scratch.
            dimension_semantics=("parallel", "arbitrary"),
            vmem_limit_bytes=vmem_limit),
    )(q, k, v, attn_bias, wq, bq, wk, bk, wv, bv, wo, bo)


def _reference(q, k, v, attn_bias, params, *, num_heads):
    """Pure-JAX reference mirroring the PyTorch forward (dropout = identity)."""
    B, S, H = q.shape
    dk = H // num_heads
    scale = dk ** -0.5
    wq, bq, wk, bk, wv, bv, wo, bo = params

    def proj(x, w, b):
        return (x @ w + b[0]).reshape(B, S, num_heads, dk)

    qh = proj(q, wq, bq).transpose(0, 2, 1, 3) * scale   # (B, nh, S, dk)
    kh = proj(k, wk, bk).transpose(0, 2, 1, 3)
    vh = proj(v, wv, bv).transpose(0, 2, 1, 3)

    s = jnp.einsum('bhqd,bhkd->bhqk', qh, kh) + attn_bias
    p = jax.nn.softmax(s, axis=-1)
    ctx = jnp.einsum('bhqk,bhkd->bhqd', p, vh)
    ctx = ctx.transpose(0, 2, 1, 3).reshape(B, S, H)
    return ctx @ wo + bo[0]


if __name__ == "__main__":
    B, S, H, NUM_HEADS = 2, 8, 32, 4

    key = jax.random.PRNGKey(0)
    keys = jax.random.split(key, 12)

    bound = 1.0 / (H ** 0.5)  # PyTorch nn.Linear default init range
    def uni(k, shape):
        return jax.random.uniform(k, shape, jnp.float32, -bound, bound)

    # Weights stored as (in, out) so y = x @ W + b.
    wq, bq = uni(keys[0], (H, H)), uni(keys[1], (1, H))
    wk, bk = uni(keys[2], (H, H)), uni(keys[3], (1, H))
    wv, bv = uni(keys[4], (H, H)), uni(keys[5], (1, H))
    wo, bo = uni(keys[6], (H, H)), uni(keys[7], (1, H))
    params = (wq, bq, wk, bk, wv, bv, wo, bo)

    q = jax.random.normal(keys[8], (B, S, H), jnp.float32)
    k = jax.random.normal(keys[9], (B, S, H), jnp.float32)
    v = jax.random.normal(keys[10], (B, S, H), jnp.float32)
    attn_bias = 0.1 * jax.random.normal(keys[11], (B, NUM_HEADS, S, S), jnp.float32)

    ref = _reference(q, k, v, attn_bias, params, num_heads=NUM_HEADS)

    # Float32 path (approx reciprocal adds ~1e-4-level relative error).
    out = multi_head_attention(q, k, v, attn_bias, params, num_heads=NUM_HEADS)
    out = jax.block_until_ready(out)
    assert out.shape == (B, S, H)
    assert jnp.allclose(out, ref, atol=2e-3, rtol=2e-3), (
        f"f32 max abs err {jnp.max(jnp.abs(out - ref))}")

    # bf16 MXU path (throughput mode on all generations; looser tolerance).
    out_bf16 = multi_head_attention(q, k, v, attn_bias, params,
                                    num_heads=NUM_HEADS, use_bf16=True)
    out_bf16 = jax.block_until_ready(out_bf16)
    assert out_bf16.shape == (B, S, H)
    assert jnp.allclose(out_bf16, ref, atol=5e-2, rtol=5e-2), (
        f"bf16 max abs err {jnp.max(jnp.abs(out_bf16 - ref))}")

    print("KERNEL_OK")
</pallas_src>

<mosaic_0001>
module attributes {stable_mosaic.version = 11 : i64} {
  func.func @_mha_kernel(%arg0: i32, %arg1: i32, %arg2: memref<1x8x32xf32, #tpu.memory_space<vmem>>, %arg3: memref<1x8x32xf32, #tpu.memory_space<vmem>>, %arg4: memref<1x8x32xf32, #tpu.memory_space<vmem>>, %arg5: memref<1x4x8x8xf32, #tpu.memory_space<vmem>>, %arg6: memref<32x32xf32, #tpu.memory_space<vmem>>, %arg7: memref<1x32xf32, #tpu.memory_space<vmem>>, %arg8: memref<32x32xf32, #tpu.memory_space<vmem>>, %arg9: memref<1x32xf32, #tpu.memory_space<vmem>>, %arg10: memref<32x32xf32, #tpu.memory_space<vmem>>, %arg11: memref<1x32xf32, #tpu.memory_space<vmem>>, %arg12: memref<32x32xf32, #tpu.memory_space<vmem>>, %arg13: memref<1x32xf32, #tpu.memory_space<vmem>>, %arg14: memref<1x8x32xf32, #tpu.memory_space<vmem>>, %arg15: memref<4x8x8xf32, #tpu.memory_space<vmem>>, %arg16: memref<4x8x8xf32, #tpu.memory_space<vmem>>) attributes {dimension_semantics = [#tpu.dimension_semantics<parallel>, #tpu.dimension_semantics<arbitrary>], iteration_bounds = array<i64: 2, 1>, scalar_prefetch = 0 : i64, scratch_operands = 2 : i64, tpu.core_type = #tpu.core_type<tc>, window_params = [{transform_indices = @transform_0, window_bounds = array<i64: 1, 8, 32>}, {transform_indices = @transform_1, window_bounds = array<i64: 1, 8, 32>}, {transform_indices = @transform_2, window_bounds = array<i64: 1, 8, 32>}, {transform_indices = @transform_3, window_bounds = array<i64: 1, 4, 8, 8>}, {pipeline_mode = #tpu.pipeline_mode<synchronous>, transform_indices = @transform_4, window_bounds = array<i64: 32, 32>}, {pipeline_mode = #tpu.pipeline_mode<synchronous>, transform_indices = @transform_5, window_bounds = array<i64: 1, 32>}, {pipeline_mode = #tpu.pipeline_mode<synchronous>, transform_indices = @transform_6, window_bounds = array<i64: 32, 32>}, {pipeline_mode = #tpu.pipeline_mode<synchronous>, transform_indices = @transform_7, window_bounds = array<i64: 1, 32>}, {pipeline_mode = #tpu.pipeline_mode<synchronous>, transform_indices = @transform_8, window_bounds = array<i64: 32, 32>}, {pipeline_mode = #tpu.pipeline_mode<synchronous>, transform_indices = @transform_9, window_bounds = array<i64: 1, 32>}, {pipeline_mode = #tpu.pipeline_mode<synchronous>, transform_indices = @transform_10, window_bounds = array<i64: 32, 32>}, {pipeline_mode = #tpu.pipeline_mode<synchronous>, transform_indices = @transform_11, window_bounds = array<i64: 1, 32>}, {transform_indices = @transform_12, window_bounds = array<i64: 1, 8, 32>}]} {
    %c0_i32 = arith.constant 0 : i32
    %0 = arith.cmpi eq, %arg1, %c0_i32 : i32
    %1 = arith.extui %0 : i1 to i32
    %c0_i32_0 = arith.constant 0 : i32
    %2 = arith.cmpi ne, %1, %c0_i32_0 : i32
    scf.if %2 {
      %c0_30 = arith.constant 0 : index
      %c0_31 = arith.constant 0 : index
      %c0_32 = arith.constant 0 : index
      %45 = vector.load %arg3[%c0_30, %c0_31, %c0_32] : memref<1x8x32xf32, #tpu.memory_space<vmem>>, vector<1x8x32xf32>
      %46 = vector.shape_cast %45 : vector<1x8x32xf32> to vector<8x32xf32>
      %c0_33 = arith.constant 0 : index
      %c0_34 = arith.constant 0 : index
      %47 = vector.load %arg8[%c0_33, %c0_34] : memref<32x32xf32, #tpu.memory_space<vmem>>, vector<32x32xf32>
      %cst_35 = arith.constant dense<0.000000e+00> : vector<8x32xf32>
      %48 = tpu.matmul %46, %47, %cst_35 {dimension_numbers = #tpu.dot_dimension_numbers<[1], [0], [0], [1], [0, 0, 1, 1], [], []>} : vector<8x32xf32>, vector<32x32xf32>, vector<8x32xf32> -> vector<8x32xf32>
      %c0_36 = arith.constant 0 : index
      %c0_37 = arith.constant 0 : index
      %49 = vector.load %arg9[%c0_36, %c0_37] : memref<1x32xf32, #tpu.memory_space<vmem>>, vector<1x32xf32>
      %50 = vector.shape_cast %49 : vector<1x32xf32> to vector<32xf32>
      %51 = vector.shape_cast %50 : vector<32xf32> to vector<1x32xf32>
      %52 = vector.broadcast %51 : vector<1x32xf32> to vector<8x32xf32>
      %53 = arith.addf %48, %52 : vector<8x32xf32>
      %c0_38 = arith.constant 0 : index
      %c0_39 = arith.constant 0 : index
      %c0_40 = arith.constant 0 : index
      %54 = vector.load %arg4[%c0_38, %c0_39, %c0_40] : memref<1x8x32xf32, #tpu.memory_space<vmem>>, vector<1x8x32xf32>
      %55 = vector.shape_cast %54 : vector<1x8x32xf32> to vector<8x32xf32>
      %c0_41 = arith.constant 0 : index
      %c0_42 = arith.constant 0 : index
      %56 = vector.load %arg10[%c0_41, %c0_42] : memref<32x32xf32, #tpu.memory_space<vmem>>, vector<32x32xf32>
      %cst_43 = arith.constant dense<0.000000e+00> : vector<8x32xf32>
      %57 = tpu.matmul %55, %56, %cst_43 {dimension_numbers = #tpu.dot_dimension_numbers<[1], [0], [0], [1], [0, 0, 1, 1], [], []>} : vector<8x32xf32>, vector<32x32xf32>, vector<8x32xf32> -> vector<8x32xf32>
      %c0_44 = arith.constant 0 : index
      %c0_45 = arith.constant 0 : index
      %58 = vector.load %arg11[%c0_44, %c0_45] : memref<1x32xf32, #tpu.memory_space<vmem>>, vector<1x32xf32>
      %59 = vector.shape_cast %58 : vector<1x32xf32> to vector<32xf32>
      %60 = vector.shape_cast %59 : vector<32xf32> to vector<1x32xf32>
      %61 = vector.broadcast %60 : vector<1x32xf32> to vector<8x32xf32>
      %62 = arith.addf %57, %61 : vector<8x32xf32>
      %63 = vector.shape_cast %53 : vector<8x32xf32> to vector<8x4x8xf32>
      %64 = tpu.transpose %63, [1, 0, 2] : vector<8x4x8xf32> -> vector<4x8x8xf32>
      %c0_46 = arith.constant 0 : index
      %c0_47 = arith.constant 0 : index
      %c0_48 = arith.constant 0 : index
      %65 = vector.load %arg15[%c0_46, %c0_47, %c0_48] : memref<4x8x8xf32, #tpu.memory_space<vmem>>, vector<4x8x8xf32>
      tpu.vector_store %arg15[%c0_46, %c0_47, %c0_48], %64 {strides = array<i32>} : memref<4x8x8xf32, #tpu.memory_space<vmem>>, vector<4x8x8xf32>,
      %66 = vector.shape_cast %62 : vector<8x32xf32> to vector<8x4x8xf32>
      %67 = tpu.transpose %66, [1, 0, 2] : vector<8x4x8xf32> -> vector<4x8x8xf32>
      %c0_49 = arith.constant 0 : index
      %c0_50 = arith.constant 0 : index
      %c0_51 = arith.constant 0 : index
      %68 = vector.load %arg16[%c0_49, %c0_50, %c0_51] : memref<4x8x8xf32, #tpu.memory_space<vmem>>, vector<4x8x8xf32>
      tpu.vector_store %arg16[%c0_49, %c0_50, %c0_51], %67 {strides = array<i32>} : memref<4x8x8xf32, #tpu.memory_space<vmem>>, vector<4x8x8xf32>,
    } else {
    }
    %c0 = arith.constant 0 : index
    %c0_1 = arith.constant 0 : index
    %c0_2 = arith.constant 0 : index
    %3 = vector.load %arg2[%c0, %c0_1, %c0_2] : memref<1x8x32xf32, #tpu.memory_space<vmem>>, vector<1x8x32xf32>
    %4 = vector.shape_cast %3 : vector<1x8x32xf32> to vector<8x32xf32>
    %c0_3 = arith.constant 0 : index
    %c0_4 = arith.constant 0 : index
    %5 = vector.load %arg6[%c0_3, %c0_4] : memref<32x32xf32, #tpu.memory_space<vmem>>, vector<32x32xf32>
    %cst = arith.constant dense<0.000000e+00> : vector<8x32xf32>
    %6 = tpu.matmul %4, %5, %cst {dimension_numbers = #tpu.dot_dimension_numbers<[1], [0], [0], [1], [0, 0, 1, 1], [], []>} : vector<8x32xf32>, vector<32x32xf32>, vector<8x32xf32> -> vector<8x32xf32>
    %c0_5 = arith.constant 0 : index
    %c0_6 = arith.constant 0 : index
    %7 = vector.load %arg7[%c0_5, %c0_6] : memref<1x32xf32, #tpu.memory_space<vmem>>, vector<1x32xf32>
    %8 = vector.shape_cast %7 : vector<1x32xf32> to vector<32xf32>
    %9 = vector.shape_cast %8 : vector<32xf32> to vector<1x32xf32>
    %10 = vector.broadcast %9 : vector<1x32xf32> to vector<8x32xf32>
    %11 = arith.addf %6, %10 : vector<8x32xf32>
    %cst_7 = arith.constant 0.353553385 : f32
    %12 = vector.broadcast %cst_7 : f32 to vector<8x32xf32>
    %13 = arith.mulf %11, %12 : vector<8x32xf32>
    %14 = vector.shape_cast %13 : vector<8x32xf32> to vector<8x4x8xf32>
    %15 = tpu.transpose %14, [1, 0, 2] : vector<8x4x8xf32> -> vector<4x8x8xf32>
    %c0_8 = arith.constant 0 : index
    %c0_9 = arith.constant 0 : index
    %c0_10 = arith.constant 0 : index
    %16 = vector.load %arg15[%c0_8, %c0_9, %c0_10] : memref<4x8x8xf32, #tpu.memory_space<vmem>>, vector<4x8x8xf32>
    "tpu.trace_start"() <{level = 10 : i32, message = "hqd,hkd->hqk"}> : () -> ()
    %cst_11 = arith.constant dense<0.000000e+00> : vector<4x8x8xf32>
    %17 = tpu.matmul %15, %16, %cst_11 {dimension_numbers = #tpu.dot_dimension_numbers<[2], [2], [1], [1], [0, 0, 0, 1, 1, 1], [0], [0]>} : vector<4x8x8xf32>, vector<4x8x8xf32>, vector<4x8x8xf32> -> vector<4x8x8xf32>
    "tpu.trace_stop"() : () -> ()
    %c0_12 = arith.constant 0 : index
    %c0_13 = arith.constant 0 : index
    %c0_14 = arith.constant 0 : index
    %c0_15 = arith.constant 0 : index
    %18 = vector.load %arg5[%c0_12, %c0_13, %c0_14, %c0_15] : memref<1x4x8x8xf32, #tpu.memory_space<vmem>>, vector<1x4x8x8xf32>
    %19 = vector.shape_cast %18 : vector<1x4x8x8xf32> to vector<4x8x8xf32>
    %20 = arith.addf %17, %19 : vector<4x8x8xf32>
    %cst_16 = arith.constant dense<0xFF800000> : vector<4x8xf32>
    %21 = vector.multi_reduction <maximumf>, %20, %cst_16 [2] : vector<4x8x8xf32> to vector<4x8xf32>
    %22 = vector.shape_cast %21 : vector<4x8xf32> to vector<4x8x1xf32>
    %23 = vector.broadcast %22 : vector<4x8x1xf32> to vector<4x8x8xf32>
    %24 = arith.subf %20, %23 : vector<4x8x8xf32>
    %25 = math.exp %24 : vector<4x8x8xf32>
    %cst_17 = arith.constant dense<0.000000e+00> : vector<4x8xf32>
    %26 = vector.multi_reduction <add>, %25, %cst_17 [2] : vector<4x8x8xf32> to vector<4x8xf32>
    %27 = vector.shape_cast %26 : vector<4x8xf32> to vector<4x8x1xf32>
    %c0_18 = arith.constant 0 : index
    %c0_19 = arith.constant 0 : index
    %c0_20 = arith.constant 0 : index
    %28 = vector.load %arg16[%c0_18, %c0_19, %c0_20] : memref<4x8x8xf32, #tpu.memory_space<vmem>>, vector<4x8x8xf32>
    "tpu.trace_start"() <{level = 10 : i32, message = "hqk,hkd->hqd"}> : () -> ()
    %cst_21 = arith.constant dense<0.000000e+00> : vector<4x8x8xf32>
    %29 = tpu.matmul %25, %28, %cst_21 {dimension_numbers = #tpu.dot_dimension_numbers<[2], [1], [1], [2], [0, 0, 0, 1, 1, 2], [0], [0]>} : vector<4x8x8xf32>, vector<4x8x8xf32>, vector<4x8x8xf32> -> vector<4x8x8xf32>
    "tpu.trace_stop"() : () -> ()
    %30 = tpu.reciprocal %27 {approx = true} : vector<4x8x1xf32> -> vector<4x8x1xf32>
    %31 = vector.broadcast %30 : vector<4x8x1xf32> to vector<4x8x8xf32>
    %32 = arith.mulf %29, %31 : vector<4x8x8xf32>
    %33 = tpu.transpose %32, [1, 0, 2] : vector<4x8x8xf32> -> vector<8x4x8xf32>
    %34 = vector.shape_cast %33 : vector<8x4x8xf32> to vector<8x32xf32>
    %c0_22 = arith.constant 0 : index
    %c0_23 = arith.constant 0 : index
    %35 = vector.load %arg12[%c0_22, %c0_23] : memref<32x32xf32, #tpu.memory_space<vmem>>, vector<32x32xf32>
    %cst_24 = arith.constant dense<0.000000e+00> : vector<8x32xf32>
    %36 = tpu.matmul %34, %35, %cst_24 {dimension_numbers = #tpu.dot_dimension_numbers<[1], [0], [0], [1], [0, 0, 1, 1], [], []>} : vector<8x32xf32>, vector<32x32xf32>, vector<8x32xf32> -> vector<8x32xf32>
    %c0_25 = arith.constant 0 : index
    %c0_26 = arith.constant 0 : index
    %37 = vector.load %arg13[%c0_25, %c0_26] : memref<1x32xf32, #tpu.memory_space<vmem>>, vector<1x32xf32>
    %38 = vector.shape_cast %37 : vector<1x32xf32> to vector<32xf32>
    %39 = vector.shape_cast %38 : vector<32xf32> to vector<1x32xf32>
    %40 = vector.broadcast %39 : vector<1x32xf32> to vector<8x32xf32>
    %41 = arith.addf %36, %40 : vector<8x32xf32>
    %c0_27 = arith.constant 0 : index
    %c0_28 = arith.constant 0 : index
    %c0_29 = arith.constant 0 : index
    %42 = vector.load %arg14[%c0_27, %c0_28, %c0_29] : memref<1x8x32xf32, #tpu.memory_space<vmem>>, vector<1x8x32xf32>
    %43 = vector.shape_cast %42 : vector<1x8x32xf32> to vector<8x32xf32>
    %44 = vector.shape_cast %41 : vector<8x32xf32> to vector<1x8x32xf32>
    tpu.vector_store %arg14[%c0_27, %c0_28, %c0_29], %44 {strides = array<i32>} : memref<1x8x32xf32, #tpu.memory_space<vmem>>, vector<1x8x32xf32>,
    return
  }
  func.func @transform_0(%arg0: i32, %arg1: i32) -> (i32, i32, i32) {
    %c0_i32 = arith.constant 0 : i32
    %c0_i32_0 = arith.constant 0 : i32
    return %arg0, %arg1, %c0_i32 : i32, i32, i32
  }
  func.func @transform_1(%arg0: i32, %arg1: i32) -> (i32, i32, i32) {
    %c0_i32 = arith.constant 0 : i32
    %c0_i32_0 = arith.constant 0 : i32
    %c0_i32_1 = arith.constant 0 : i32
    return %arg0, %c0_i32, %c0_i32_0 : i32, i32, i32
  }
  func.func @transform_2(%arg0: i32, %arg1: i32) -> (i32, i32, i32) {
    %c0_i32 = arith.constant 0 : i32
    %c0_i32_0 = arith.constant 0 : i32
    %c0_i32_1 = arith.constant 0 : i32
    return %arg0, %c0_i32, %c0_i32_0 : i32, i32, i32
  }
  func.func @transform_3(%arg0: i32, %arg1: i32) -> (i32, i32, i32, i32) {
    %c0_i32 = arith.constant 0 : i32
    %c0_i32_0 = arith.constant 0 : i32
    %c0_i32_1 = arith.constant 0 : i32
    return %arg0, %c0_i32, %arg1, %c0_i32_0 : i32, i32, i32, i32
  }
  func.func @transform_4(%arg0: i32, %arg1: i32) -> (i32, i32) {
    %c0_i32 = arith.constant 0 : i32
    %c0_i32_0 = arith.constant 0 : i32
    %c0_i32_1 = arith.constant 0 : i32
    return %c0_i32, %c0_i32_0 : i32, i32
  }
  func.func @transform_5(%arg0: i32, %arg1: i32) -> (i32, i32) {
    %c0_i32 = arith.constant 0 : i32
    %c0_i32_0 = arith.constant 0 : i32
    %c0_i32_1 = arith.constant 0 : i32
    return %c0_i32, %c0_i32_0 : i32, i32
  }
  func.func @transform_6(%arg0: i32, %arg1: i32) -> (i32, i32) {
    %c0_i32 = arith.constant 0 : i32
    %c0_i32_0 = arith.constant 0 : i32
    %c0_i32_1 = arith.constant 0 : i32
    return %c0_i32, %c0_i32_0 : i32, i32
  }
  func.func @transform_7(%arg0: i32, %arg1: i32) -> (i32, i32) {
    %c0_i32 = arith.constant 0 : i32
    %c0_i32_0 = arith.constant 0 : i32
    %c0_i32_1 = arith.constant 0 : i32
    return %c0_i32, %c0_i32_0 : i32, i32
  }
  func.func @transform_8(%arg0: i32, %arg1: i32) -> (i32, i32) {
    %c0_i32 = arith.constant 0 : i32
    %c0_i32_0 = arith.constant 0 : i32
    %c0_i32_1 = arith.constant 0 : i32
    return %c0_i32, %c0_i32_0 : i32, i32
  }
  func.func @transform_9(%arg0: i32, %arg1: i32) -> (i32, i32) {
    %c0_i32 = arith.constant 0 : i32
    %c0_i32_0 = arith.constant 0 : i32
    %c0_i32_1 = arith.constant 0 : i32
    return %c0_i32, %c0_i32_0 : i32, i32
  }
  func.func @transform_10(%arg0: i32, %arg1: i32) -> (i32, i32) {
    %c0_i32 = arith.constant 0 : i32
    %c0_i32_0 = arith.constant 0 : i32
    %c0_i32_1 = arith.constant 0 : i32
    return %c0_i32, %c0_i32_0 : i32, i32
  }
  func.func @transform_11(%arg0: i32, %arg1: i32) -> (i32, i32) {
    %c0_i32 = arith.constant 0 : i32
    %c0_i32_0 = arith.constant 0 : i32
    %c0_i32_1 = arith.constant 0 : i32
    return %c0_i32, %c0_i32_0 : i32, i32
  }
  func.func @transform_12(%arg0: i32, %arg1: i32) -> (i32, i32, i32) {
    %c0_i32 = arith.constant 0 : i32
    %c0_i32_0 = arith.constant 0 : i32
    return %arg0, %arg1, %c0_i32 : i32, i32, i32
  }
}

</mosaic_0001>

<bundles_post_ra>
// kernel: tpu_custom_call.1
= control target key start
LH: loop header
LB: loop body
LE: loop exit
PB: predicated region body
PF: predicated region fallthrough
CT: control target
= control target key end

     0   :  { %s3617_s0 = inlined_call_operand.hbm [shape: f32[2,8,32], index: 0, kind: input, shape index: {}]   ;;  %s3618_s1 = inlined_call_operand.hbm [shape: f32[2,8,32], index: 1, kind: input, shape index: {}]   ;;  %s3619_s2 = inlined_call_operand.hbm [shape: f32[2,8,32], index: 2, kind: input, shape index: {}]   ;;  %s3620_s3 = inlined_call_operand.hbm [shape: f32[2,4,8,8], index: 3, kind: input, shape index: {}]   ;;  %s3621_s4 = inlined_call_operand.hbm [shape: f32[32,32], index: 4, kind: input, shape index: {}]   ;;  %s3622_s5 = inlined_call_operand.vmem [shape: f32[1,32], index: 5, kind: input, shape index: {}]   ;;  %s3623_s6 = inlined_call_operand.hbm [shape: f32[32,32], index: 6, kind: input, shape index: {}]   ;;  %s3624_s7 = inlined_call_operand.vmem [shape: f32[1,32], index: 7, kind: input, shape index: {}]   ;;  %s3625_s8 = inlined_call_operand.hbm [shape: f32[32,32], index: 8, kind: input, shape index: {}]   ;;  %s3626_s9 = inlined_call_operand.vmem [shape: f32[1,32], index: 9, kind: input, shape index: {}]   ;;  %s3627_s10 = inlined_call_operand.hbm [shape: f32[32,32], index: 10, kind: input, shape index: {}]   ;;  %s3628_s11 = inlined_call_operand.vmem [shape: f32[1,32], index: 11, kind: input, shape index: {}]   ;;  %s3629_s12 = inlined_call_operand.hbm [shape: f32[2,8,32], index: 12, kind: output, shape index: {}]  }
   0x1   :  { %3645 = sst [smem:[#allocation33_spill]] %s3617_s0 }
   0x2   :  { %3646 = sst [smem:[#allocation34_spill]] %s3618_s1 }
   0x3   :  { %3647 = sst [smem:[#allocation35_spill]] %s3621_s4 }
   0x4   :  { %3648 = sst [smem:[#allocation36_spill]] %s3623_s6 }
   0x5   :  { %3649 = sst [smem:[#allocation37_spill]] %s3625_s8 }
   0x6   :  { %3650 = sst [smem:[#allocation38_spill]] %s3626_s9 }
   0x7   :  { %3651 = sst [smem:[#allocation39_spill]] %s3628_s11 }
   0x8   :  { %3652 = sst [smem:[#allocation40_spill]] %s3629_s12 }
   0x9   :  { %17 = vsyncpa [#allocation5], 0 }
   0xa   :  { %19 = vsyncpa [#allocation5 + $0x1], 0 }
   0xb   :  { %20 = vsyncpa [#allocation8], 0 }
   0xc   :  { %22 = vsyncpa [#allocation8 + $0x1], 0 }
   0xd   :  { %23 = vsyncpa [#allocation11], 0 }
   0xe   :  { %25 = vsyncpa [#allocation11 + $0x1], 0 }
   0xf   :  { %26 = vsyncpa [#allocation14], 0 }
  0x10   :  { %27 = vsyncpa [#allocation17], 0 }
  0x11   :  { %28 = vsyncpa [#allocation6], 0 }
  0x12   :  { %30 = vsyncpa [#allocation6 + $0x1], 0  ;;  %s3149_s21 = smov 0   ;;  %s3151_s22 = smov 0  }
  0x13   :  { %s3153_s23 = smov 0   ;;  %s3155_s24 = smov 0  }
  0x14   :  { %s3157_s25 = smov 0   ;;  %s3159_s26 = smov 0  }
  0x15 LB: > { %3653 = sst [smem:[#allocation26_spill]] %s3041_s21  ;;  %s3180_s27 = sadd.s32 4294967295, %s3061_s26   ;;  %s3061_s26 = sphi %s3159_s26, %s36_s26   ;;  %s3057_s25 = sphi %s3157_s25, %s3698_s25   ;;  %s3053_s24 = sphi %s3155_s24, %s3697_s24   ;;  %s3049_s23 = sphi %s3153_s23, %s3693_s23   ;;  %s3045_s22 = sphi %s3151_s22, %s3696_s22   ;;  %s3041_s21 = sphi %s3149_s21, %s3695_s21  }
  0x16   : > { %3654 = sst [smem:[#allocation27_spill]] %s3049_s23  ;;  %s2420_s28 = sadd.s32 4294967294, %s3061_s26  }
  0x17   : > { %3655 = sst [smem:[#allocation28_spill]] %s3053_s24  ;;  %p70_p0 = scmp.ne.s32.totalorder %s3045_s22, %s3041_s21 }
  0x18   : > { %p3641_p1 = scmp.eq.s32.totalorder %s3180_s27, 0  ;;  %p344_p2 = scmp.eq.s32.totalorder %s3180_s27, 1 }
  0x19   : > { %p350_p3 = scmp.eq.s32.totalorder %s2420_s28, 1  ;;  %p2421_p5 = scmp.ge.s32.totalorder %s3061_s26, 1 }
  0x1a   : > { %p3189_p4 = por %p3641_p1, %p70_p0  ;;  %p357_p7 = scmp.lt.s32.totalorder %s3061_s26, 3 }
  0x1b   : > { %p3194_p6 = por %p350_p3, %p70_p0  ;;  %s3063_s14 = smov [#allocation12]  }
  0x1c   : > { %p3199_p8 = pnand %p2421_p5, %p357_p7  ;;  %s369_s15 = sshll.u32 %s3063_s14, 4  ;;  %s370_s15 = int_to_ptr.vmem [resolvable:$true] %s369_s15 }
  0x1d   : > { %s3657_s30 = scalar_select %p3194_p6, 1, 0 }
  0x1e   : > { %p2625_p9 = pneg %p3199_p8  ;;  %s3064_s17 = smov [#allocation13]  }
  0x1f   : > { %3658 = sst [smem:[#allocation29_spill]] %s3657_s30  ;;  %s385_s18 = sshll.u32 %s3064_s17, 4  ;;  %s386_s18 = int_to_ptr.vmem [resolvable:$true] %s385_s18 }
  0x20   : > { %p3208_p11 = pnand %p2625_p9, %p3641_p1  ;;  %s2756_s19 = scalar_lea.vmem %s370_s15, 512 }
  0x21   : > { %p2757_p13 = scmp.ne.s32.totalorder %s370_s15, %s2756_s19  ;;  %p2764_p5 = scmp.lt.s32.totalorder %s370_s15, %s370_s15 }
  0x22   : > { %p3642_p12 = pneg %p3208_p11  ;;  %p2765_p7 = scmp.lt.s32.totalorder %s2756_s19, %s2756_s19 }
  0x24   : > { %p2759_p0 = pnand %p2757_p13, %p3642_p12  ;;  %p2766_p10 = por %p2765_p7, %p2764_p5 }
  0x26   : > { %p2760_p3 = pneg %p2759_p0 }
  0x28   : > { %p2767_p9 = pnand %p2766_p10, %p2760_p3 }
  0x2a   : > { %2770 = shalt.err (!%p2767_p9)
}
  0x2b   : > { %s3632_s20 = smov 128   ;;  %s3634_s28 = smov 8  }
  0x2c   : > { %s3661_s4 = sld [smem:[#allocation35_spill]]  ;;  %s2782_s30 = scalar_lea.vmem %s386_s18, 512 }
  0x2d   : > { %p2783_p13 = scmp.ne.s32.totalorder %s386_s18, %s2782_s30  ;;  %p2790_p10 = scmp.lt.s32.totalorder %s386_s18, %s386_s18 }
  0x2e   : > { %p2791_p3 = scmp.lt.s32.totalorder %s2782_s30, %s2782_s30 }
  0x2f   : > { %p2785_p0 = pnand %p2783_p13, %p3642_p12 }
  0x30   : > { %p2792_p7 = por %p2791_p3, %p2790_p10 }
  0x31   : > { %p2786_p5 = pneg %p2785_p0 }
  0x32   : > { %2628 = dma.hbm_to_vmem [thread:$0]  (!%p3208_p11), %s3661_s4, 512, %s370_s15, [#allocation11], %s3632_s20, %s3632_s20, %s3634_s28  }
  0x33   : > { %p2793_p9 = pnand %p2792_p7, %p2786_p5 }
  0x35   : > { %2796 = shalt.err (!%p2793_p9)
}
  0x36   : > { %s3662_s6 = sld [smem:[#allocation36_spill]]  ;;  %s48_s30 = sadd.s32 1, %s3057_s25 }
  0x37   : > { %s57_s15 = sadd.s32 1, %s3049_s23  ;;  %p50_p13 = scmp.ge.s32.totalorder %s48_s30, 2 }
  0x38   : > { %p64_p0 = scmp.ne.s32.totalorder %s3049_s23, %s3045_s22  ;;  %p65_p5 = scmp.eq.s32.totalorder %s3061_s26, 0 }
  0x39   : > { %p2659_p10 = scmp.lt.s32.totalorder %s3061_s26, 2  ;;  %s3700_s30 = smov (%p50_p13, %s48_s30), 0 }
  0x3a   : > { %3663 = sst [smem:[#allocation30_spill]] %s3700_s30  ;;  %p66_p3 = por %p65_p5, %p64_p0 }
  0x3b   : > { %p3246_p7 = por %p344_p2, %p64_p0  ;;  %s52_s14 = ssub.s32 %s3057_s25, %s3700_s30 }
  0x3c   : > { %2631 = dma.hbm_to_vmem [thread:$0]  (!%p3208_p11), %s3662_s6, 512, %s386_s18, [#allocation14], %s3632_s20, %s3632_s20, %s3634_s28  }
  0x3d   : > { %s3664_s21 = scalar_select %p3246_p7, 1, 0 }
  0x3e   : > { %s3253_s18 = sand.u32 1, %s3049_s23   ;;  %p55_p9 = scmp.eq.s32.totalorder %s52_s14, 0 }
  0x3f   : > { %3665 = sst [smem:[#allocation31_spill]] %s3664_s21  ;;  %s3256_s17 = sshll.u32 %s3253_s18, 3 }
  0x40   : > { %s3259_s19 = sshll.u32 %s3057_s25, 7  ;;  %p3261_p13 = pnand %p2659_p10, %p66_p3 }
  0x41   : > { %s3266_s28 = scalar_select %p55_p9, %s3049_s23, %s57_s15  }
  0x42   : > { %s3643_s4 = sand.u32 1, %s3061_s26   ;;  %s3668_s1 = sld [smem:[#allocation34_spill]] }
  0x43   : > { %3667 = sst [smem:[#allocation32_spill]] %s3266_s28  ;;  %s457_s14 = scalar_lea.vmem [#allocation7], %s3256_s17 }
  0x44   : > { %s464_s11 = sshll.u32 %s457_s14, 4  ;;  %s3276_s21 = scalar_lea.sflag [#allocation8], %s3643_s4  ;;  %s465_s11 = int_to_ptr.vmem [resolvable:$true] %s464_s11 }
  0x45   : > { %p3644_p2 = pneg %p3261_p13  ;;  %s2810_s24 = scalar_lea.vmem %s465_s11, 128 }
  0x46   : > { %p2811_p0 = scmp.ne.s32.totalorder %s465_s11, %s2810_s24  ;;  %s3067_s15 = smov [#allocation7]  }
  0x47   : > { %s2815_s28 = sshll.u32 %s3067_s15, 4  ;;  %s2816_s28 = int_to_ptr.vmem [resolvable:$false] %s2815_s28 }
  0x48   : > { %s462_s12 = scalar_lea.hbm %s3668_s1, %s3259_s19  ;;  %p2813_p5 = pnand %p2811_p0, %p3644_p2 }
  0x49   : > { %s2817_s23 = scalar_lea.vmem %s2816_s28, 256  ;;  %p2818_p3 = scmp.lt.s32.totalorder %s465_s11, %s2816_s28 }
  0x4a   : > { %p2814_p10 = pneg %p2813_p5  ;;  %p2819_p9 = scmp.lt.s32.totalorder %s2817_s23, %s2810_s24 }
  0x4c   : > { %p2820_p1 = por %p2819_p9, %p2818_p3 }
  0x4e   : > { %p2821_p12 = pnand %p2820_p1, %p2814_p10 }
  0x50   : > { %2824 = shalt.err (!%p2821_p12)
}
  0x51   : > { %2644 = dma.hbm_to_vmem [thread:$0]  (!%p3261_p13), %s462_s12, 128, %s465_s11, %s3276_s21  }
  0x52   : > { %s2433_s6 = sshll.u32 %s3253_s18, 5  ;;  %s3068_s30 = smov [#allocation15]  }
  0x53   : > { %s401_s14 = sshll.u32 %s3068_s30, 4  ;;  %s493_s4 = scalar_lea.vmem [#allocation10], %s2433_s6  ;;  %s402_s14 = int_to_ptr.vmem [resolvable:$true] %s401_s14 }
  0x54   : > { %s501_s1 = sshll.u32 %s493_s4, 4  ;;  %s2836_s15 = scalar_lea.vmem %s402_s14, 512  ;;  %s3287_s1 = int_to_ptr.vmem [resolvable:$true] %s501_s1 }
  0x55   : > { %p2837_p0 = scmp.ne.s32.totalorder %s402_s14, %s2836_s15  ;;  %p3669_p5 = pneg %p3208_p11 }
  0x56   : > { %p2844_p10 = scmp.lt.s32.totalorder %s402_s14, %s402_s14  ;;  %p2845_p3 = scmp.lt.s32.totalorder %s2836_s15, %s2836_s15 }
  0x57   : > { %p2839_p1 = pnand %p2837_p0, %p3669_p5 }
  0x58   : > { %p2846_p9 = por %p2845_p3, %p2844_p10 }
  0x59   : > { %p2840_p12 = pneg %p2839_p1 }
  0x5b   : > { %p2847_p2 = pnand %p2846_p9, %p2840_p12 }
  0x5d   : > { %2850 = shalt.err (!%p2847_p2)
}
  0x5e   : > { %s3670_s11 = smov 8   ;;  %s3671_s12 = smov 128  }
  0x5f   : > { %s3672_s8 = sld [smem:[#allocation37_spill]]  ;;  %s3069_s24 = smov [#allocation16]  }
  0x60   : > { %s417_s28 = sshll.u32 %s3069_s24, 4  ;;  %s418_s28 = int_to_ptr.vmem [resolvable:$true] %s417_s28 }
  0x61   : > { %s2862_s6 = scalar_lea.vmem %s418_s28, 512  ;;  %p2870_p2 = scmp.lt.s32.totalorder %s418_s28, %s418_s28 }
  0x62   : > { %p2863_p0 = scmp.ne.s32.totalorder %s418_s28, %s2862_s6  ;;  %p2871_p10 = scmp.lt.s32.totalorder %s2862_s6, %s2862_s6 }
  0x64   : > { %p2865_p1 = pnand %p2863_p0, %p3669_p5  ;;  %p2872_p3 = por %p2871_p10, %p2870_p2 }
  0x65   : > { %2634 = dma.hbm_to_vmem [thread:$0]  (!%p3208_p11), %s3672_s8, 512, %s402_s14, [#allocation14], %s3671_s12, %s3671_s12, %s3670_s11  }
  0x66   : > { %p2866_p12 = pneg %p2865_p1 }
  0x68   : > { %p2873_p9 = pnand %p2872_p3, %p2866_p12 }
  0x6a   : > { %2876 = shalt.err (!%p2873_p9)
}
  0x6b   : > { %2637 = dma.hbm_to_vmem [thread:$0]  (!%p3208_p11), %s3627_s10, 512, %s418_s28, [#allocation17], %s3671_s12, %s3671_s12, %s3670_s11  }
  0x6c   : > { %s3673_s0 = sld [smem:[#allocation33_spill]]  ;;  %s438_s24 = scalar_lea.vmem [#allocation4], %s3256_s17 }
  0x6d   : > { %s446_s6 = sshll.u32 %s438_s24, 4  ;;  %s435_s8 = scalar_lea.sflag [#allocation5], %s3253_s18  ;;  %s447_s6 = int_to_ptr.vmem [resolvable:$true] %s446_s6 }
  0x6e   : > { %s2890_s16 = scalar_lea.vmem %s447_s6, 128  ;;  %p3674_p5 = pneg %p3261_p13 }
  0x6f   : > { %p2891_p0 = scmp.ne.s32.totalorder %s447_s6, %s2890_s16  ;;  %s3070_s30 = smov [#allocation4]  }
  0x70   : > { %s2895_s14 = sshll.u32 %s3070_s30, 4  ;;  %s2896_s14 = int_to_ptr.vmem [resolvable:$false] %s2895_s14 }
  0x71   : > { %p2893_p1 = pnand %p2891_p0, %p3674_p5  ;;  %s2897_s9 = scalar_lea.vmem %s2896_s14, 256 }
  0x72   : > { %s444_s23 = scalar_lea.hbm %s3673_s0, %s3259_s19  ;;  %p2898_p2 = scmp.lt.s32.totalorder %s447_s6, %s2896_s14 }
  0x73   : > { %p2894_p12 = pneg %p2893_p1  ;;  %p2899_p11 = scmp.lt.s32.totalorder %s2897_s9, %s2890_s16 }
  0x75   : > { %p2900_p10 = por %p2899_p11, %p2898_p2 }
  0x77   : > { %p2901_p3 = pnand %p2900_p10, %p2894_p12 }
  0x79   : > { %2904 = shalt.err (!%p2901_p3)
}
  0x7a   : > { %2641 = dma.hbm_to_vmem [thread:$0]  (!%p3261_p13), %s444_s23, 128, %s447_s6, %s435_s8  }
  0x7b   : > { %s480_s15 = scalar_lea.hbm %s3619_s2, %s3259_s19  ;;  %s475_s4 = scalar_lea.vmem [#allocation9], %s3256_s17 }
  0x7c   : > { %s482_s24 = sshll.u32 %s475_s4, 4  ;;  %s2478_s30 = sshll.u32 %s3057_s25, 9  ;;  %s483_s24 = int_to_ptr.vmem [resolvable:$true] %s482_s24 }
  0x7d   : > { %s2918_s14 = scalar_lea.vmem %s483_s24, 128  ;;  %p3675_p0 = pmov %p3674_p5 }
  0x7e   : > { %p2919_p9 = scmp.ne.s32.totalorder %s483_s24, %s2918_s14  ;;  %s3071_s9 = smov [#allocation9]  }
  0x7f   : > { %s2923_s16 = sshll.u32 %s3071_s9, 4  ;;  %s2924_s16 = int_to_ptr.vmem [resolvable:$false] %s2923_s16 }
  0x80   : > { %p2921_p5 = pnand %p2919_p9, %p3675_p0  ;;  %s2925_s0 = scalar_lea.vmem %s2924_s16, 256 }
  0x81   : > { %p2926_p12 = scmp.lt.s32.totalorder %s483_s24, %s2924_s16  ;;  %p2927_p2 = scmp.lt.s32.totalorder %s2925_s0, %s2918_s14 }
  0x82   : > { %p2922_p1 = pneg %p2921_p5 }
  0x83   : > { %p2928_p11 = por %p2927_p2, %p2926_p12 }
  0x85   : > { %p2929_p10 = pnand %p2928_p11, %p2922_p1 }
  0x87   : > { %2932 = shalt.err (!%p2929_p10)
}
  0x88   : > { %2647 = dma.hbm_to_vmem [thread:$0]  (!%p3261_p13), %s480_s15, 128, %s483_s24, %s3276_s21  }
  0x89   : > { %s500_s19 = scalar_lea.hbm %s3620_s3, %s2478_s30  ;;  %s3676_s23 = sand.u32 1, %s3061_s26  }
  0x8a   : > { %s490_s6 = scalar_lea.sflag [#allocation11], %s3676_s23  ;;  %s2946_s18 = scalar_lea.vmem %s3287_s1, 512 }
  0x8b   : > { %p2947_p3 = scmp.ne.s32.totalorder %s3287_s1, %s2946_s18  ;;  %p3677_p9 = pmov %p3675_p0 }
  0x8c   : > { %s3072_s0 = smov [#allocation10]  }
  0x8d   : > { %p2949_p0 = pnand %p2947_p3, %p3677_p9  ;;  %s2951_s28 = sshll.u32 %s3072_s0, 4  ;;  %s2952_s28 = int_to_ptr.vmem [resolvable:$false] %s2951_s28 }
  0x8e   : > { %s2953_s4 = scalar_lea.vmem %s2952_s28, 1024  ;;  %p2954_p1 = scmp.lt.s32.totalorder %s3287_s1, %s2952_s28 }
  0x8f   : > { %p2950_p5 = pneg %p2949_p0  ;;  %p2955_p12 = scmp.lt.s32.totalorder %s2953_s4, %s2946_s18 }
  0x91   : > { %p2956_p2 = por %p2955_p12, %p2954_p1 }
  0x93   : > { %p2957_p11 = pnand %p2956_p2, %p2950_p5 }
  0x95   : > { %2960 = shalt.err (!%p2957_p11)
}
  0x96   : > { %2650 = dma.hbm_to_vmem [thread:$0]  (!%p3261_p13), %s500_s19, 512, %s3287_s1, %s490_s6, %s3671_s12, %s3671_s12, %s3670_s11  }
  0x97   : > { %513 = sbr.rel (%p3199_p8) target bundleno = 1432 (0x598), region = 68  ;;  %s3354_s21 = sand.u32 (!%p3199_p8), 1, %s3045_s22  }
  0x98   : > { %s3357_s15 = sshll.u32 (!%p3199_p8), %s3354_s21, 3  ;;  %s516_s24 = scalar_lea.sflag (!%p3199_p8), [#allocation5], %s3354_s21 }
  0x99   : > { %s519_s30 = scalar_lea.vmem (!%p3199_p8), [#allocation4], %s3357_s15 }
  0x9c   : > { %3012 = dma.done.wait (%p3189_p4), %s516_s24, 128  }
  0x9d   : > { %3014 = vsyncadd (%p3189_p4), %s516_s24, 4294967168  ;;  %s524_s1 = sand.u32 1, %s3180_s27   ;;  %s528_s20 = scalar_lea.vmem [#allocation7], %s3357_s15 }
  0x9e   : > { %s525_s13 = scalar_lea.sflag [#allocation8], %s524_s1 }
  0x9f   : > { %3016 = dma.done.wait (%p3189_p4), %s525_s13, 256  }
  0xa0   : > { %3018 = vsyncadd (%p3189_p4), %s525_s13, 4294967040  ;;  %s2440_s11 = sshll.u32 %s3354_s21, 5  ;;  %s537_s12 = scalar_lea.vmem [#allocation9], %s3357_s15 }
  0xa1   : > { %s543_s14 = scalar_lea.sflag [#allocation11], %s524_s1  ;;  %s3373_s9 = scalar_lea.vmem [#allocation10], %s2440_s11 }
  0xa2   : > { %3020 = dma.done.wait (%p3189_p4), %s543_s14, 512  }
  0xa3   : > { %3022 = vsyncadd (%p3189_p4), %s543_s14, 4294966784  ;;  %p3678_p8 = scmp.eq.s32.totalorder %s3180_s27, 0 }
  0xa5   : > { %3024 = dma.done.wait (%p3678_p8), [#allocation11], 512   ;;  %p3679_p13 = pmov %p3678_p8 }
  0xa6   : > { %p3680_p10 = pmov %p3678_p8 }
  0xa7   : > { %3026 = vsyncadd (%p3679_p13), [#allocation11], 4294966784 }
  0xa8   : > { %3028 = dma.done.wait (%p3680_p10), [#allocation14], 1024   ;;  %p3681_p3 = pmov %p3678_p8 }
  0xaa   : > { %3030 = vsyncadd (%p3681_p3), [#allocation14], 4294966272  ;;  %p3682_p9 = pmov %p3681_p3 }
  0xab   : > { %p3683_p0 = pmov %p3681_p3 }
  0xac   : > { %3032 = dma.done.wait (%p3682_p9), [#allocation17], 512  }
  0xad   : > { %3034 = vsyncadd (%p3683_p0), [#allocation17], 4294966784  ;;  %v3073_v0 = vmov 0.0   ;;  %vm3074_vm0 = vmmov 0   ;;  %v626_v1 = vld [vmem:[#allocation13 + $0x18] sm:$0xff]  ;;  %v625_v2 = vld [vmem:[#allocation13 + $0x10] sm:$0xff]  ;;  %v808_v31 = vlaneseq }
  0xae   : > { %2515 = vmatprep.subr.mxu0 %v3073_v0  ;;  %2523 = vmatprep.mubr.msk.f32.mxu0 %vm3074_vm0, %v3073_v0  ;;  %v624_v3 = vld [vmem:[#allocation13 + $0x8] sm:$0xff]  ;;  %v712_v4 = vld [vmem:[#allocation15 + $0x18] sm:$0xff]  ;;  %v623_v5 = vld [vmem:[#allocation13] sm:$0xff]  ;;  %vm634_vm1 = vcmask 261120   ;;  %s3075_s16 = smov 104   ;;  %s3076_s8 = smov 120  }
  0xaf   : > { %2526 = vmatprep.subr.mxu1 %v3073_v0  ;;  %2534 = vmatprep.mubr.msk.f32.mxu1 %vm3074_vm0, %v3073_v0  ;;  %v622_v6 = vld [vmem:[%s528_s20] sm:$0xff]  ;;  %v1098_v7 = vld [vmem:[#allocation12 + $0x18] sm:$0xff]  ;;  %v1097_v8 = vld [vmem:[#allocation12 + $0x10] sm:$0xff]  ;;  %s3077_s23 = smov 112   ;;  %s3684_s0 = sld [smem:[#allocation38_spill]]  ;;  %v809_v35 = vshrl.u32 %v808_v31, 7 }
  0xb0   : > { %2516 = vmatpush3.msra.mxu0 %v626_v1  ;;  %2527 = vmatpush3.msra.mxu1 %v712_v4  ;;  %v1096_v9 = vld [vmem:[#allocation12 + $0x8] sm:$0xff]  ;;  %v1095_v10 = vld [vmem:[#allocation12] sm:$0xff]  ;;  %v1094_v11 = vld [vmem:[%s519_s30] sm:$0xff]  ;;  %v3078_v29 = vmov 1983009808   ;;  %vm939_vm2 = vcmask 64512  }
  0xb1   : > { %2517 = vmatprep.subr.mxu0 %v3073_v0  ;;  %2528 = vmatprep.subr.mxu1 %v3073_v0  ;;  %v711_v12 = vld [vmem:[#allocation15 + $0x10] sm:$0xff]  ;;  %v710_v13 = vld [vmem:[#allocation15 + $0x8] sm:$0xff]  ;;  %v709_v14 = vld [vmem:[#allocation15] sm:$0xff]  ;;  %v806_v30 = vunpack.c.l.s4 %v3078_v29  ;;  %v3079_v32 = vmov 1934713408   ;;  %s3080_s28 = smov 16  }
  0xb2   : > { %2518 = vmatpush3.msra.mxu0 %v625_v2  ;;  %2529 = vmatpush3.msra.mxu1 %v711_v12  ;;  %v708_v15 = vld [vmem:[%s537_s12] sm:$0xff]  ;;  %v838_v33 = vunpack.c.l.s4 %v3079_v32  ;;  %s3685_s4 = sld [smem:[#allocation28_spill]]  ;;  %s3081_s24 = smov 8   ;;  %vm2129_vm3 = vcmask 130048   ;;  %vm2131_vm4 = vcmask 195584  }
  0xb3   : > { %2519 = vmatprep.subr.mxu0 %v3073_v0  ;;  %2530 = vmatprep.subr.mxu1 %v3073_v0  ;;  %v2446_v16 = vld [vmem:[%s3624_s7] ss:$0 sm:$0xff]  ;;  %v807_v34 = vunpack.c.0.s8 %v806_v30  ;;  %s3082_s30 = smov 24   ;;  %s3687_s11 = sld [smem:[#allocation39_spill]] }
  0xb4   : > { %2520 = vmatpush3.msra.mxu0 %v624_v3  ;;  %2531 = vmatpush3.msra.mxu1 %v710_v13  ;;  %v2454_v20 = vld [vmem:[%s3622_s5] ss:$0 sm:$0xff]  ;;  %v839_v38 = vunpack.c.0.s8 %v838_v33  ;;  %s617_s14 = scalar_lea.vmem [#allocation18], %s3357_s15  ;;  %s2219_s17 = scalar_lea.sflag [#allocation6], %s3354_s21 }
  0xb5   : > { %2521 = vmatprep.subr.mxu0 %v3073_v0  ;;  %2532 = vmatprep.subr.mxu1 %v3073_v0  ;;  %v2448_v25 = vld [vmem:[%s3684_s0] ss:$0 sm:$0xff]  ;;  %v3438_v39 = vsub.s32 %v807_v34, %v809_v35 }
  0xb6   : > { %2522 = vmatpush3.msra.mxu0 %v623_v5  ;;  %2533 = vmatpush3.msra.mxu1 %v709_v14  ;;  %v3440_v45 = vsub.s32 %v839_v38, %v809_v35 }
  0xb7   : > { %2524 = vmatmul.mubr.msk.f32.vlgmr.msra.gmra.mxu0 %vm634_vm1, %v622_v6  ;;  %2537 = vmatprep.subr.mxu0 %v3073_v0 }
  0xb8   : > { %2538 = vmatpush3.msra.mxu0 %v1098_v7  ;;  %2545 = vmatprep.mubr.msk.f32.mxu0 %vm3074_vm0, %v3073_v0  ;;  %s2475_s12 = sshll.u32 %s3685_s4, 7 }
  0xb9   : > { %2539 = vmatprep.subr.mxu0 %v3073_v0  ;;  %2535 = vmatmul.mubr.msk.f32.vlgmr.msra.gmra.mxu1 %vm634_vm1, %v708_v15 }
  0xba   : > { %2540 = vmatpush3.msra.mxu0 %v1097_v8  ;;  %2548 = vmatprep.subr.mxu1 %v3073_v0 }
  0xbb   : > { %2541 = vmatprep.subr.mxu0 %v3073_v0  ;;  %2550 = vmatprep.mubr.msk.f32.mxu1 %vm3074_vm0, %v3073_v0 }
  0xbc   : > { %2542 = vmatpush3.msra.mxu0 %v1096_v9 }
  0xbd   : > { %2543 = vmatprep.subr.mxu0 %v3073_v0 }
  0xbe   : > { %2544 = vmatpush3.msra.mxu0 %v1095_v10 }
  0xbf   : > { %2546 = vmatmul.mubr.msk.f32.vlgmr.msra.gmra.mxu0 %vm634_vm1, %v1094_v11  ;;  %2568 = vmatprep.subr.mxu0 %v3073_v0 }
  0xc0   : > { %2570 = vmatprep.mubr.msk.f32.mxu0 %vm3074_vm0, %v3073_v0 }
 0x177   : > { %v704_v17 = vpop.f32.mrf.mxu0 }
 0x178   : > { %v705_v18 = vadd.f32 %v2446_v16, %v704_v17 }
 0x179   : > { %v2525_v19 = vpop.f32.mrf.mxu0  ;;  %v789_v26 = vpop.f32.mrf.mxu1 }
 0x17a   : > { %800 = vrot.lane.b32.xlu1 %v705_v18, %s3075_s16  ;;  %794 = vrot.lane.b32.xlu0 %v705_v18, %s3076_s8  ;;  %v3433_v27 = vadd.f32 %v2448_v25, %v789_v26 }
 0x17b   : > { %v2536_v28 = vpop.f32.mrf.mxu1 }
 0x17e   : > { %797 = vrot.lane.b32.xlu0 %v705_v18, %s3077_s23 }
 0x17f   : > { %v1176_v21 = vpop.f32.mrf.mxu0 }
 0x180   : > { %v1177_v22 = vadd.f32 %v2454_v20, %v1176_v21 }
 0x181   : > { %v2547_v23 = vpop.f32.mrf.mxu0 }
 0x182   : > { %v1180_v24 = vmul.f32 0.35355338, %v1177_v22 }
 0x184   : > { %1185 = vrot.lane.b32.xlu0 %v1180_v24, %s3077_s23  ;;  %1182 = vrot.lane.b32.xlu1 %v1180_v24, %s3076_s8 }
 0x188   : > { %1188 = vrot.lane.b32.xlu1 %v1180_v24, %s3075_s16  ;;  %945 = vrot.lane.b32.xlu0 %v3433_v27, %s3076_s8 }
 0x18c   : > { %948 = vrot.lane.b32.xlu1 %v3433_v27, %s3077_s23  ;;  %951 = vrot.lane.b32.xlu0 %v3433_v27, %s3075_s16  ;;  %s3688_s16 = sld [smem:[#allocation40_spill]]  ;;  %s3083_s23 = smov [#allocation18]  }
 0x18d   : > { %s2965_s15 = sshll.u32 %s3083_s23, 4  ;;  %s2966_s15 = int_to_ptr.vmem [resolvable:$false] %s2965_s15 }
 0x18e   : > { %s2967_s6 = scalar_lea.vmem %s2966_s15, 256 }
 0x192   : > { %s3574_s8 = scalar_lea.hbm %s3688_s16, %s2475_s12 }
 0x1ec   : > { %v801_v36 = vpop.permute.xlu1 %800  ;;  %v795_v37 = vpop.permute.xlu0 %794 }
 0x1ed   : > { %v819_v40 = vcombine.low %v795_v37, %v801_v36  ;;  %v820_v41 = vcombine.high %v795_v37, %v801_v36 }
 0x1ef   : > { %v827_v46 = vrot.slane %v819_v40, %v3438_v39  ;;  %v834_v47 = vrot.slane %v820_v41, %v3438_v39 }
 0x1f0   : > { %v798_v42 = vpop.permute.xlu0 %797 }
 0x1f1   : > { %v803_v43 = vcombine.low %v705_v18, %v798_v42  ;;  %v804_v44 = vcombine.high %v705_v18, %v798_v42 }
 0x1f3   : > { %v811_v48 = vrot.slane %v803_v43, %v3438_v39  ;;  %v818_v49 = vrot.slane %v804_v44, %v3438_v39 }
 0x1f5   : > { %v835_v50 = vcombine.low %v811_v48, %v827_v46  ;;  %v836_v51 = vcombine.high %v811_v48, %v827_v46  ;;  %v851_v52 = vcombine.low %v818_v49, %v834_v47  ;;  %v852_v53 = vcombine.high %v818_v49, %v834_v47 }
 0x1f6   : > { %v1183_v54 = vpop.permute.xlu1 %1182  ;;  %v1186_v59 = vpop.permute.xlu0 %1185 }
 0x1f7   : > { %v843_v55 = vrot.slane %v835_v50, %v3440_v45  ;;  %v850_v56 = vrot.slane %v836_v51, %v3440_v45  ;;  %v859_v57 = vrot.slane %v851_v52, %v3440_v45  ;;  %v866_v58 = vrot.slane %v852_v53, %v3440_v45 }
 0x1f8   : > { %v1191_v1 = vcombine.low %v1180_v24, %v1186_v59  ;;  %v1192_v2 = vcombine.high %v1180_v24, %v1186_v59 }
 0x1f9   : > { %v871_v60 = vcombine.low %v843_v55, %v850_v56  ;;  %v2450_v61 = vcombine.high %v843_v55, %v850_v56  ;;  %v887_v62 = vcombine.low %v859_v57, %v866_v58  ;;  %v2451_v63 = vcombine.high %v859_v57, %v866_v58 }
 0x1fa   : > { %v1189_v3 = vpop.permute.xlu1 %1188  ;;  %v1199_v14 = vrot.slane %v1191_v1, %v3438_v39  ;;  %v1206_v15 = vrot.slane %v1192_v2, %v3438_v39 }
 0x1fb   : > { %v878_v4 = vrot.slane %v871_v60, %v3438_v39  ;;  %v886_v5 = vrot.slane %v2450_v61, %v3438_v39  ;;  %v894_v6 = vrot.slane %v887_v62, %v3438_v39  ;;  %v902_v7 = vrot.slane %v2451_v63, %v3438_v39  ;;  %v946_v61 = vpop.permute.xlu0 %945 }
 0x1fc   : > { %v1207_v8 = vcombine.low %v1183_v54, %v1189_v3  ;;  %v1208_v9 = vcombine.high %v1183_v54, %v1189_v3 }
 0x1fd   : > { %v903_v10 = vcombine.low %v878_v4, %v886_v5  ;;  %v904_v11 = vcombine.high %v878_v4, %v886_v5  ;;  %v919_v12 = vcombine.low %v894_v6, %v902_v7  ;;  %v920_v13 = vcombine.high %v894_v6, %v902_v7 }
 0x1fe   : > { %v1215_v16 = vrot.slane %v1207_v8, %v3438_v39  ;;  %v1222_v17 = vrot.slane %v1208_v9, %v3438_v39  ;;  %v949_v62 = vpop.permute.xlu1 %948 }
 0x1ff   : > { %v911_v18 = vrot.slane %v903_v10, %v3440_v45  ;;  %v918_v19 = vrot.slane %v904_v11, %v3440_v45  ;;  %v927_v20 = vrot.slane %v919_v12, %v3440_v45  ;;  %v934_v21 = vrot.slane %v920_v13, %v3440_v45  ;;  %v952_v2 = vpop.permute.xlu0 %951 }
 0x200   : > { %v1223_v22 = vcombine.low %v1199_v14, %v1215_v16  ;;  %v1224_v23 = vcombine.high %v1199_v14, %v1215_v16  ;;  %v1239_v24 = vcombine.low %v1206_v15, %v1222_v17  ;;  %v1240_v25 = vcombine.high %v1206_v15, %v1222_v17 }
 0x201   : > { %v935_v26 = vcombine.low %v911_v18, %v927_v20  ;;  %v936_v28 = vcombine.high %v911_v18, %v927_v20  ;;  %v937_v29 = vcombine.low %v918_v19, %v934_v21  ;;  %v938_v30 = vcombine.high %v918_v19, %v934_v21 }
 0x202   : > { %v1231_v31 = vrot.slane %v1223_v22, %v3440_v45  ;;  %v1238_v32 = vrot.slane %v1224_v23, %v3440_v45  ;;  %v1247_v33 = vrot.slane %v1239_v24, %v3440_v45  ;;  %v1254_v34 = vrot.slane %v1240_v25, %v3440_v45 }
 0x203   : > { %940 = vst.msk [vmem:[#allocation2] sm:$0xff] %vm939_vm2, %v935_v26  ;;  %941 = vst.msk [vmem:[#allocation2 + $0x8] sm:$0xff] %vm939_vm2, %v936_v28  ;;  %v954_v63 = vcombine.low %v3433_v27, %v949_v62  ;;  %v955_v1 = vcombine.high %v3433_v27, %v949_v62  ;;  %v970_v3 = vcombine.low %v946_v61, %v952_v2 }
 0x204   : > { %942 = vst.msk [vmem:[#allocation2 + $0x10] sm:$0xff] %vm939_vm2, %v937_v29  ;;  %943 = vst.msk [vmem:[#allocation2 + $0x18] sm:$0xff] %vm939_vm2, %v938_v30  ;;  %v1259_v35 = vcombine.low %v1231_v31, %v1238_v32  ;;  %v2456_v36 = vcombine.high %v1231_v31, %v1238_v32  ;;  %v1275_v37 = vcombine.low %v1247_v33, %v1254_v34 }
 0x205   : > { %v2457_v38 = vcombine.high %v1247_v33, %v1254_v34  ;;  %v971_v4 = vcombine.high %v946_v61, %v952_v2  ;;  %v962_v5 = vrot.slane %v954_v63, %v3438_v39  ;;  %v969_v6 = vrot.slane %v955_v1, %v3438_v39 }
 0x206   : > { %v1266_v40 = vrot.slane %v1259_v35, %v3438_v39  ;;  %v1274_v41 = vrot.slane %v2456_v36, %v3438_v39  ;;  %v1282_v42 = vrot.slane %v1275_v37, %v3438_v39  ;;  %v978_v7 = vrot.slane %v970_v3, %v3438_v39 }
 0x207   : > { %v1290_v43 = vrot.slane %v2457_v38, %v3438_v39  ;;  %v985_v8 = vrot.slane %v971_v4, %v3438_v39 }
 0x208   : > { %v1291_v44 = vcombine.low %v1266_v40, %v1274_v41  ;;  %v1292_v50 = vcombine.high %v1266_v40, %v1274_v41  ;;  %v986_v9 = vcombine.low %v962_v5, %v978_v7  ;;  %v987_v10 = vcombine.high %v962_v5, %v978_v7  ;;  %v1331_v40 = vld [vmem:[%s3373_s9] sm:$0xff] }
 0x209   : > { %v1307_v46 = vcombine.low %v1282_v42, %v1290_v43  ;;  %v1308_v51 = vcombine.high %v1282_v42, %v1290_v43  ;;  %v1002_v11 = vcombine.low %v969_v6, %v985_v8  ;;  %v1003_v12 = vcombine.high %v969_v6, %v985_v8 }
 0x20a   : > { %v1327_v47 = vld [vmem:[#allocation2] sm:$0xff]  ;;  %v1299_v48 = vrot.slane %v1291_v44, %v3440_v45  ;;  %v1328_v53 = vld [vmem:[#allocation2 + $0x8] sm:$0xff]  ;;  %v1306_v55 = vrot.slane %v1292_v50, %v3440_v45  ;;  %v994_v13 = vrot.slane %v986_v9, %v3440_v45  ;;  %v1001_v14 = vrot.slane %v987_v10, %v3440_v45  ;;  %v1332_v44 = vld [vmem:[%s3373_s9 + $0x8] sm:$0xff] }
 0x20b   : > { %v1315_v49 = vrot.slane %v1307_v46, %v3440_v45  ;;  %2549 = vmatpush3.xpose.msk.msra.mxu1 %vm939_vm2, %v1327_v47  ;;  %v1322_v56 = vrot.slane %v1308_v51, %v3440_v45  ;;  %v1329_v57 = vld [vmem:[#allocation2 + $0x10] sm:$0xff]  ;;  %v1330_v59 = vld [vmem:[#allocation2 + $0x18] sm:$0xff]  ;;  %v1010_v27 = vrot.slane %v1002_v11, %v3440_v45  ;;  %v1017_v15 = vrot.slane %v1003_v12, %v3440_v45  ;;  %v1333_v50 = vld [vmem:[%s3373_s9 + $0x10] sm:$0xff] }
 0x20c   : > { %2553 = vmatprep.subr.mxu1 %v3073_v0  ;;  %v1022_v16 = vcombine.low %v994_v13, %v1001_v14  ;;  %v2452_v17 = vcombine.high %v994_v13, %v1001_v14 }
 0x20d   : > { %v1323_v52 = vcombine.low %v1299_v48, %v1315_v49  ;;  %v1324_v54 = vcombine.high %v1299_v48, %v1315_v49  ;;  %v1325_v58 = vcombine.low %v1306_v55, %v1322_v56  ;;  %v1326_v60 = vcombine.high %v1306_v55, %v1322_v56  ;;  %v1334_v55 = vld [vmem:[%s3373_s9 + $0x18] sm:$0xff]  ;;  %s2233_s9 = sshll.u32 %s617_s14, 4  ;;  %s2234_s9 = int_to_ptr.vmem [resolvable:$true] %s2233_s9 }
 0x20e   : > { %v1038_v18 = vcombine.low %v1010_v27, %v1017_v15  ;;  %v2453_v19 = vcombine.high %v1010_v27, %v1017_v15  ;;  %v1029_v20 = vrot.slane %v1022_v16, %v3438_v39  ;;  %v1037_v21 = vrot.slane %v2452_v17, %v3438_v39  ;;  %s2961_s19 = scalar_lea.vmem %s2234_s9, 128  ;;  %p2968_p12 = scmp.lt.s32.totalorder %s2234_s9, %s2966_s15 }
 0x20f   : > { %2551 = vmatmul.mubr.msk.f32.vlgmr.msra.gmra.mxu1 %vm939_vm2, %v1323_v52  ;;  %p2962_p4 = scmp.ne.s32.totalorder %s2234_s9, %s2961_s19  ;;  %p2969_p2 = scmp.lt.s32.totalorder %s2967_s6, %s2961_s19 }
 0x210   : > { %2554 = vmatpush3.xpose.msk.msra.mxu1 %vm939_vm2, %v1328_v53  ;;  %2555 = vmatprep.mubr.msk.f32.mxu1 %vm3074_vm0, %v3073_v0  ;;  %v1045_v22 = vrot.slane %v1038_v18, %v3438_v39  ;;  %v1053_v23 = vrot.slane %v2453_v19, %v3438_v39  ;;  %v1054_v24 = vcombine.low %v1029_v20, %v1037_v21  ;;  %v2136_v19 = vld [vmem:[#allocation16 + $0x18] sm:$0xff] }
 0x211   : > { %2558 = vmatprep.subr.mxu1 %v3073_v0  ;;  %v1055_v25 = vcombine.high %v1029_v20, %v1037_v21  ;;  %p2963_p5 = pnand %p2962_p4, %p3246_p7  ;;  %p2970_p11 = por %p2969_p2, %p2968_p12 }
 0x212   : > { %v1070_v26 = vcombine.low %v1045_v22, %v1053_v23  ;;  %v1071_v28 = vcombine.high %v1045_v22, %v1053_v23  ;;  %v1062_v29 = vrot.slane %v1054_v24, %v3440_v45 }
 0x213   : > { %2556 = vmatmul.mubr.msk.f32.vlgmr.msra.gmra.mxu1 %vm939_vm2, %v1324_v54  ;;  %v1069_v30 = vrot.slane %v1055_v25, %v3440_v45  ;;  %p2964_p1 = pneg %p2963_p5 }
 0x214   : > { %2559 = vmatpush3.xpose.msk.msra.mxu1 %vm939_vm2, %v1329_v57  ;;  %2560 = vmatprep.mubr.msk.f32.mxu1 %vm3074_vm0, %v3073_v0  ;;  %v1078_v31 = vrot.slane %v1070_v26, %v3440_v45  ;;  %v1085_v32 = vrot.slane %v1071_v28, %v3440_v45 }
 0x215   : > { %2563 = vmatprep.subr.mxu1 %v3073_v0  ;;  %p2971_p8 = pnand %p2970_p11, %p2964_p1 }
 0x216   : > { %v1086_v33 = vcombine.low %v1062_v29, %v1078_v31  ;;  %v1087_v34 = vcombine.high %v1062_v29, %v1078_v31  ;;  %v1088_v35 = vcombine.low %v1069_v30, %v1085_v32  ;;  %v1089_v36 = vcombine.high %v1069_v30, %v1085_v32 }
 0x217   : > { %2561 = vmatmul.mubr.msk.f32.vlgmr.msra.gmra.mxu1 %vm939_vm2, %v1325_v58 }
 0x218   : > { %2564 = vmatpush3.xpose.msk.msra.mxu1 %vm939_vm2, %v1330_v59  ;;  %2565 = vmatprep.mubr.msk.f32.mxu1 %vm3074_vm0, %v3073_v0  ;;  %1090 = vst.msk [vmem:[#allocation3] sm:$0xff] %vm939_vm2, %v1086_v33  ;;  %1091 = vst.msk [vmem:[#allocation3 + $0x8] sm:$0xff] %vm939_vm2, %v1087_v34 }
 0x219   : > { %2573 = vmatprep.subr.mxu1 %v3073_v0  ;;  %1092 = vst.msk [vmem:[#allocation3 + $0x10] sm:$0xff] %vm939_vm2, %v1088_v35  ;;  %1093 = vst.msk [vmem:[#allocation3 + $0x18] sm:$0xff] %vm939_vm2, %v1089_v36 }
 0x21b   : > { %2566 = vmatmul.mubr.msk.f32.vlgmr.msra.gmra.mxu1 %vm939_vm2, %v1326_v60 }
 0x21c   : > { %2575 = vmatprep.mubr.msk.f32.mxu1 %vm3074_vm0, %v3073_v0 }
 0x21f   : > { %v1676_v37 = vld [vmem:[#allocation3] sm:$0xff]  ;;  %v1677_v38 = vld [vmem:[#allocation3 + $0x8] sm:$0xff] }
 0x220   : > { %2569 = vmatpush3.msra.mxu0 %v1676_v37  ;;  %2574 = vmatpush3.msra.mxu1 %v1677_v38  ;;  %v1678_v11 = vld [vmem:[#allocation3 + $0x10] sm:$0xff]  ;;  %v1679_v14 = vld [vmem:[#allocation3 + $0x18] sm:$0xff] }
 0x221   : > { %2578 = vmatprep.subr.mxu0 %v3073_v0  ;;  %2583 = vmatprep.subr.mxu1 %v3073_v0 }
 0x2cf   : > { %v1408_v41 = vpop.f32.mrf.mxu1 }
 0x2d0   : > { %v1409_v42 = vadd.f32 %v1408_v41, %v1331_v40 }
 0x2d1   : > { %v2552_v43 = vpop.f32.mrf.mxu1 }
 0x2d2   : > { %v1640_v46 = vsel %vm939_vm2, %v1409_v42, -inf }
 0x2d3   : > { %1641 = vmax.xlane.f32.xlu0 %v1640_v46  ;;  %v1484_v47 = vpop.f32.mrf.mxu1 }
 0x2d4   : > { %v1485_v48 = vadd.f32 %v1484_v47, %v1332_v44 }
 0x2d5   : > { %v2557_v49 = vpop.f32.mrf.mxu1 }
 0x2d6   : > { %v1643_v51 = vsel %vm939_vm2, %v1485_v48, -inf }
 0x2d7   : > { %1644 = vmax.xlane.f32.xlu1 %v1643_v51  ;;  %v1560_v52 = vpop.f32.mrf.mxu1 }
 0x2d8   : > { %v1561_v53 = vadd.f32 %v1560_v52, %v1333_v50 }
 0x2d9   : > { %v2562_v54 = vpop.f32.mrf.mxu1 }
 0x2da   : > { %v1646_v56 = vsel %vm939_vm2, %v1561_v53, -inf }
 0x2db   : > { %1647 = vmax.xlane.f32.xlu1 %v1646_v56  ;;  %v1636_v57 = vpop.f32.mrf.mxu1  ;;  %v2134_v56 = vld [vmem:[#allocation16 + $0x8] sm:$0xff] }
 0x2dc   : > { %v1637_v58 = vadd.f32 %v1636_v57, %v1334_v55  ;;  %v2135_v55 = vld [vmem:[#allocation16 + $0x10] sm:$0xff] }
 0x2dd   : > { %v2567_v59 = vpop.f32.mrf.mxu1 }
 0x2de   : > { %v1649_v60 = vsel %vm939_vm2, %v1637_v58, -inf }
 0x2df   : > { %1650 = vmax.xlane.f32.xlu0 %v1649_v60 }
 0x35c   : > { %v1642_v61 = vpop.xlane.xlu0 %1641 }
 0x35d   : > { %v1652_v62 = vsub.f32 %v1409_v42, %v1642_v61 }
 0x35f   : > { %v1656_v63 = vmul.f32 1.442695, %v1652_v62 }
 0x360   : > { %v1645_v1 = vpop.xlane.xlu1 %1644 }
 0x361   : > { %2729 = vpow2.f32 %v1656_v63  ;;  %v1653_v2 = vsub.f32 %v1485_v48, %v1645_v1 }
 0x363   : > { %v1658_v3 = vmul.f32 1.442695, %v1653_v2  ;;  %v2133_v2 = vld [vmem:[#allocation16] sm:$0xff] }
 0x364   : > { %v1648_v4 = vpop.xlane.xlu1 %1647 }
 0x365   : > { %2731 = vpow2.f32 %v1658_v3  ;;  %v1654_v5 = vsub.f32 %v1561_v53, %v1648_v4 }
 0x367   : > { %v1660_v6 = vmul.f32 1.442695, %v1654_v5 }
 0x368   : > { %v1651_v7 = vpop.xlane.xlu0 %1650 }
 0x369   : > { %2733 = vpow2.f32 %v1660_v6  ;;  %v1655_v8 = vsub.f32 %v1637_v58, %v1651_v7 }
 0x36b   : > { %v1662_v9 = vmul.f32 1.442695, %v1655_v8 }
 0x36d   : > { %2735 = vpow2.f32 %v1662_v9 }
 0x36e   : > { %v2730_v10 = vpop.eup %2729 }
 0x36f   : > { %2571 = vmatmul.mubr.msk.f32.vlgmr.msra.gmra.mxu0 %vm939_vm2, %v2730_v10  ;;  %v1664_v12 = vsel %vm939_vm2, %v2730_v10, 0.0 }
 0x370   : > { %2579 = vmatpush3.msra.mxu0 %v1678_v11  ;;  %1665 = vadd.xlane.f32.xlu0 %v1664_v12 }
 0x371   : > { %2580 = vmatprep.mubr.msk.f32.mxu0 %vm3074_vm0, %v3073_v0  ;;  %2588 = vmatprep.subr.mxu0 %v3073_v0 }
 0x372   : > { %v2732_v13 = vpop.eup %2731 }
 0x373   : > { %2576 = vmatmul.mubr.msk.f32.vlgmr.msra.gmra.mxu1 %vm939_vm2, %v2732_v13  ;;  %v1667_v27 = vsel %vm939_vm2, %v2732_v13, 0.0 }
 0x374   : > { %2584 = vmatpush3.msra.mxu1 %v1679_v14  ;;  %1668 = vadd.xlane.f32.xlu1 %v1667_v27 }
 0x375   : > { %2585 = vmatprep.mubr.msk.f32.mxu1 %vm3074_vm0, %v3073_v0 }
 0x376   : > { %v2734_v15 = vpop.eup %2733 }
 0x377   : > { %2581 = vmatmul.mubr.msk.f32.vlgmr.msra.gmra.mxu0 %vm939_vm2, %v2734_v15  ;;  %v1670_v16 = vsel %vm939_vm2, %v2734_v15, 0.0 }
 0x378   : > { %1671 = vadd.xlane.f32.xlu0 %v1670_v16  ;;  %2596 = vmatprep.mubr.msk.f32.mxu0 %vm3074_vm0, %v3073_v0 }
 0x379   : > { %2589 = vmatpush3.msra.mxu0 %v2136_v19 }
 0x37a   : > { %v2736_v17 = vpop.eup %2735  ;;  %2590 = vmatprep.subr.mxu0 %v3073_v0 }
 0x37b   : > { %2586 = vmatmul.mubr.msk.f32.vlgmr.msra.gmra.mxu1 %vm939_vm2, %v2736_v17  ;;  %v1673_v18 = vsel %vm939_vm2, %v2736_v17, 0.0  ;;  %2591 = vmatpush3.msra.mxu0 %v2135_v55 }
 0x37c   : > { %1674 = vadd.xlane.f32.xlu1 %v1673_v18  ;;  %2592 = vmatprep.subr.mxu0 %v3073_v0 }
 0x37d   : > { %2593 = vmatpush3.msra.mxu0 %v2134_v56 }
 0x37e   : > { %2594 = vmatprep.subr.mxu0 %v3073_v0 }
 0x37f   : > { %2595 = vmatpush3.msra.mxu0 %v2133_v2 }
 0x3f9   : > { %v1666_v20 = vpop.xlane.xlu0 %1665 }
 0x3fd   : > { %v1669_v21 = vpop.xlane.xlu1 %1668 }
 0x401   : > { %v1672_v22 = vpop.xlane.xlu0 %1671 }
 0x402   : > { %2737 = vrcp.f32 %v1672_v22 }
 0x403   : > { %2739 = vrcp.f32 %v1666_v20 }
 0x404   : > { %2741 = vrcp.f32 %v1669_v21  ;;  %v2472_v21 = vld [vmem:[%s3687_s11] ss:$0 sm:$0xff] }
 0x405   : > { %v1675_v23 = vpop.xlane.xlu1 %1674 }
 0x406   : > { %2743 = vrcp.f32 %v1675_v23 }
 0x40f   : > { %v2738_v29 = vpop.eup %2737 }
 0x410   : > { %v2740_v32 = vpop.eup %2739 }
 0x411   : > { %v2742_v34 = vpop.eup %2741 }
 0x413   : > { %v2744_v36 = vpop.eup %2743 }
 0x42f   : > { %v1749_v24 = vpop.f32.mrf.mxu0 }
 0x430   : > { %v1976_v35 = vmul.f32 %v2740_v32, %v1749_v24 }
 0x431   : > { %v2572_v25 = vpop.f32.mrf.mxu0 }
 0x433   : > { %v1822_v26 = vpop.f32.mrf.mxu1 }
 0x434   : > { %v1977_v38 = vmul.f32 %v2742_v34, %v1822_v26 }
 0x435   : > { %v2577_v28 = vpop.f32.mrf.mxu1 }
 0x437   : > { %v1895_v30 = vpop.f32.mrf.mxu0 }
 0x438   : > { %v1978_v31 = vmul.f32 %v2738_v29, %v1895_v30 }
 0x439   : > { %v2582_v33 = vpop.f32.mrf.mxu0 }
 0x43a   : > { %v1980_v40 = vcombine.low %v1976_v35, %v1978_v31  ;;  %v1981_v41 = vcombine.high %v1976_v35, %v1978_v31 }
 0x43b   : > { %v1968_v37 = vpop.f32.mrf.mxu1 }
 0x43c   : > { %v1979_v42 = vmul.f32 %v2744_v36, %v1968_v37  ;;  %v1988_v47 = vrot.slane %v1980_v40, %v3438_v39  ;;  %v1995_v48 = vrot.slane %v1981_v41, %v3438_v39 }
 0x43d   : > { %v2587_v43 = vpop.f32.mrf.mxu1 }
 0x43e   : > { %v1996_v44 = vcombine.low %v1977_v38, %v1979_v42  ;;  %v1997_v46 = vcombine.high %v1977_v38, %v1979_v42 }
 0x440   : > { %v2004_v49 = vrot.slane %v1996_v44, %v3438_v39  ;;  %v2011_v50 = vrot.slane %v1997_v46, %v3438_v39 }
 0x442   : > { %v2012_v51 = vcombine.low %v1988_v47, %v2004_v49  ;;  %v2013_v52 = vcombine.high %v1988_v47, %v2004_v49  ;;  %v2028_v53 = vcombine.low %v1995_v48, %v2011_v50  ;;  %v2029_v54 = vcombine.high %v1995_v48, %v2011_v50 }
 0x444   : > { %v2020_v57 = vrot.slane %v2012_v51, %v3440_v45  ;;  %v2027_v58 = vrot.slane %v2013_v52, %v3440_v45  ;;  %v2036_v59 = vrot.slane %v2028_v53, %v3440_v45  ;;  %v2043_v60 = vrot.slane %v2029_v54, %v3440_v45 }
 0x446   : > { %v2048_v61 = vcombine.low %v2020_v57, %v2027_v58  ;;  %v2470_v62 = vcombine.high %v2020_v57, %v2027_v58  ;;  %v2064_v63 = vcombine.low %v2036_v59, %v2043_v60  ;;  %v2471_v1 = vcombine.high %v2036_v59, %v2043_v60 }
 0x448   : > { %v2055_v3 = vrot.slane %v2048_v61, %v3438_v39  ;;  %v2063_v4 = vrot.slane %v2470_v62, %v3438_v39  ;;  %v2071_v5 = vrot.slane %v2064_v63, %v3438_v39  ;;  %v2079_v6 = vrot.slane %v2471_v1, %v3438_v39 }
 0x44a   : > { %v2081_v7 = vcombine.high %v2055_v3, %v2063_v4  ;;  %v2097_v8 = vcombine.high %v2071_v5, %v2079_v6  ;;  %v2080_v9 = vcombine.low %v2055_v3, %v2063_v4  ;;  %v2096_v10 = vcombine.low %v2071_v5, %v2079_v6 }
 0x44c   : > { %v2095_v11 = vrot.slane %v2081_v7, %v3440_v45  ;;  %v2111_v12 = vrot.slane %v2097_v8, %v3440_v45  ;;  %v2088_v0 = vrot.slane %v2080_v9, %v3440_v45  ;;  %v2104_v13 = vrot.slane %v2096_v10, %v3440_v45 }
 0x44e   : > { %v2114_v14 = vcombine.low %v2095_v11, %v2111_v12  ;;  %v2113_v27 = vcombine.high %v2088_v0, %v2104_v13  ;;  %v2112_v15 = vcombine.low %v2088_v0, %v2104_v13  ;;  %v2115_v39 = vcombine.high %v2095_v11, %v2111_v12 }
 0x450   : > { %2121 = vrot.lane.b32.xlu1 %v2114_v14, %s3080_s28  ;;  %2117 = vrot.lane.b32.xlu0 %v2113_v27, %s3081_s24 }
 0x454   : > { %2125 = vrot.lane.b32.xlu1 %v2115_v39, %s3082_s30 }
 0x4c2   : > { %v2122_v16 = vpop.permute.xlu1 %2121  ;;  %v2118_v17 = vpop.permute.xlu0 %2117 }
 0x4c3   : > { %v2128_v18 = vsel %vm939_vm2, %v2112_v15, %v2118_v17 }
 0x4c4   : > { %v2130_v19 = vsel %vm2129_vm3, %v2128_v18, %v2122_v16 }
 0x4c6   : > { %v2126_v45 = vpop.permute.xlu1 %2125 }
 0x4c7   : > { %v2132_v20 = vsel %vm2131_vm4, %v2130_v19, %v2126_v45 }
 0x4c8   : > { %2597 = vmatmul.mubr.msk.f32.vlgmr.msra.gmra.mxu0 %vm634_vm1, %v2132_v20 }
 0x588   : > { %v2213_v22 = vpop.f32.mrf.mxu0 }
 0x589   : > { %v2214_v23 = vadd.f32 %v2472_v21, %v2213_v22 }
 0x58a   : > { %v2598_v24 = vpop.f32.mrf.mxu0 }
 0x58b   : > { %2217 = vst.msk [vmem:[%s617_s14] sm:$0xff] %vm634_vm1, %v2214_v23 }
 0x58c   : > { %2974 = shalt.err (!%p2971_p8)
}
 0x58d   : > { %s2975_s18 = scalar_lea.hbm %s3574_s8, 128  ;;  %s2979_s28 = scalar_lea.hbm %s3688_s16, 256 }
 0x58e   : > { %p2976_p13 = scmp.ne.s32.totalorder %s3574_s8, %s2975_s18  ;;  %p2980_p9 = scmp.lt.s32.totalorder %s3574_s8, %s3688_s16 }
 0x58f   : > { %p2981_p0 = scmp.lt.s32.totalorder %s2979_s28, %s2975_s18 }
 0x590   : > { %p2977_p10 = pnand %p2976_p13, %p3246_p7 }
 0x591   : > { %p2982_p4 = por %p2981_p0, %p2980_p9 }
 0x592   : > { %p2978_p3 = pneg %p2977_p10 }
 0x594   : > { %p2983_p5 = pnand %p2982_p4, %p2978_p3 }
 0x596   : > { %2986 = shalt.err (!%p2983_p5)
}
 0x597   : > { %2623 = dma.vmem_to_hbm [thread:$0]  (%p3246_p7), %s2234_s9, 128, %s3574_s8, %s2219_s17  }
 0x598 PF: > { %s3689_s30 = sld [smem:[#allocation26_spill]]  ;;  %p3691_p1 = scmp.ge.s32.totalorder %s3061_s26, 2 }
 0x59a   : > { %p2652_p12 = pnand %p3691_p1, %p3194_p6 }
 0x59c   : > { %p2653_p2 = pneg %p2652_p12 }
 0x59e   : > { %s2245_s20 = sand.u32 1, %s3689_s30  }
 0x59f   : > { %s2246_s11 = scalar_lea.sflag [#allocation6], %s2245_s20 }
 0x5a0   : > { %3036 = dma.done.wait (%p2653_p2), %s2246_s11, 128  }
 0x5a1   : > { %3038 = vsyncadd (%p2653_p2), %s2246_s11, 4294967168  ;;  %s36_s26 = sadd.s32 1, %s3061_s26   ;;  %s3692_s12 = sld [smem:[#allocation27_spill]] }
 0x5a2   : > { %p33_p11 = scmp.ge.s32.totalorder %s36_s26, 4   ;;  %s3693_s23 = sld [smem:[#allocation32_spill]] }
 0x5a3   : > { %s3694_s1 = sld [smem:[#allocation30_spill]]  ;;  %s3695_s21 = smov %s3045_s22 }
 0x5a4   : > { %s3697_s24 = smov %s3057_s25 }
 0x5a5   :  { %35 = sbr.rel (!%p33_p11) target bundleno = 21 (0x15), region = 170 }
 0x5a7   : > { %s3696_s22 = smov %s3692_s12 }
 0x5a9   : > { %s3698_s25 = smov %s3694_s1 }
 0x5aa   :  { %2251 = vsyncpa [#allocation5], 1 }
 0x5ab   :  { %2253 = vsyncpa [#allocation5 + $0x1], 1 }
 0x5ac   :  { %2254 = vsyncpa [#allocation8], 1 }
 0x5ad   :  { %2256 = vsyncpa [#allocation8 + $0x1], 1 }
 0x5ae   :  { %2257 = vsyncpa [#allocation11], 1 }
 0x5af   :  { %2259 = vsyncpa [#allocation11 + $0x1], 1 }
 0x5b0   :  { %2260 = vsyncpa [#allocation14], 1 }
 0x5b1   :  { %2261 = vsyncpa [#allocation17], 1 }
 0x5b2   :  { %2262 = vsyncpa [#allocation6], 1 }
 0x5b3   :  { %2264 = vsyncpa [#allocation6 + $0x1], 1 }

</bundles_post_ra>
